<compile_context>
chip_gen: v7x
topology: tpu7x:2x2x1
jax: 0.10.0
libtpu: 0.0.40
codegen_flags: <defaults>
</compile_context>

<pallas_src>
import functools

import numpy as np
import jax
import jax.numpy as jnp
from jax.experimental import pallas as pl
from jax.experimental.pallas import tpu as pltpu


FOLD = 2          # images folded into the sublane/channel axis (2*C = 8 = f32 sublanes)
BN_MAX = 32       # max image-pairs per grid step (~1.5 MiB double-buffered traffic)


def _tap_validity_masks(H, W, KH, KW, pad):
    """mask[kh*KW+kw, h*W+w] = 1 iff tap (kh,kw) reads inside the image."""
    r = np.arange(H)[:, None]
    c = np.arange(W)[None, :]
    masks = np.empty((KH * KW, H * W), np.float32)
    for kh in range(KH):
        for kw in range(KW):
            dh, dw = kh - pad, kw - pad
            v = (r + dh >= 0) & (r + dh < H) & (c + dw >= 0) & (c + dw < W)
            masks[kh * KW + kw] = v.reshape(-1).astype(np.float32)
    return masks


def make_fused_dwsep_kernel(H, W, KH, KW, pad, C, O, Bn, fold):
    HW = H * W

    def kernel(x_ref, coeff_ref, pww_ref, pwb_ref, o_ref):
        # x_ref    : (Bn, fold*C, HW)     fold images packed into sublane axis
        # coeff_ref: (KH*KW, fold*C, HW)  precomputed mask(t) * depthwise tap(t)
        # pww_ref  : (O, C)               pointwise weight
        # pwb_ref  : (O, 1)               pointwise bias + pww @ depthwise bias
        # o_ref    : (fold*Bn, O, HW)     output, channel-major (NCHW-flat)
        pww = pww_ref[...].astype(jnp.float32)                            # (O, C)
        pwb = jnp.broadcast_to(pwb_ref[...].astype(jnp.float32), (O, HW))  # hoisted

        for b in range(Bn):
            x = x_ref[b].astype(jnp.float32)                  # (fold*C, HW)

            # Depthwise KxK: static tap unroll; each tap = XLU lane roll + one FMA
            # against the precomputed (mask * weight) coefficient plane.
            acc = jnp.zeros((fold * C, HW), jnp.float32)
            for kh in range(KH):
                for kw in range(KW):
                    t = kh * KW + kw
                    off = (kh - pad) * W + (kw - pad)
                    shifted = x if off == 0 else pltpu.roll(x, (-off) % HW, 1)
                    acc = acc + shifted * coeff_ref[t]

            # Pointwise 1x1 as C broadcast-FMAs on the VPU per folded image.
            # TODO(synk): for larger C/O (>~32) switch to one MXU matmul with
            # W_eff[o, c*KK+t] = pww[o,c]*dww[c,t] over the stacked tap planes.
            for j in range(fold):
                out = pwb
                for c in range(C):
                    out = out + pww[:, c:c + 1] * acc[j * C + c:j * C + c + 1, :]
                o_ref[fold * b + j] = out.astype(o_ref.dtype)  # lane-dense store

    return kernel


@functools.partial(jax.jit, static_argnames=("padding",))
def depthwise_separable_conv(x, dw_w, dw_b, pw_w, pw_b, *, padding):
    """x: (N,C,H,W); dw_w: (C,1,KH,KW); dw_b: (C,); pw_w: (O,C,1,1); pw_b: (O,)."""
    N, C, H, W = x.shape
    KH, KW = dw_w.shape[2], dw_w.shape[3]
    O = pw_w.shape[0]
    HW = H * W
    KK = KH * KW

    if (H + 2 * padding - KH + 1, W + 2 * padding - KW + 1) != (H, W):
        # TODO(synk): flat-lane kernel assumes "same" conv geometry
        # (2*padding == kernel_size - 1); other geometries are not implemented.
        raise NotImplementedError("only 'same' depthwise geometry supported")

    # ---- grid sizing ---------------------------------------------------
    P = pl.cdiv(N, FOLD)              # image pairs (sublane fold)
    Bn = min(BN_MAX, P)               # pairs per grid step
    if P >= 2:
        Bn = min(Bn, pl.cdiv(P, 2))   # keep >=2 steps so both v7x TCs get work
    G = pl.cdiv(P, Bn)
    P_pad = G * Bn
    N_pad = P_pad * FOLD

    if N_pad != N:
        x = jnp.pad(x, ((0, N_pad - N), (0, 0), (0, 0), (0, 0)))
    # Free, contiguous reshape of NCHW: consecutive image pairs share sublanes.
    x_pairs = x.reshape(P_pad, FOLD * C, HW)

    # ---- resident constants ---------------------------------------------
    masks = jnp.asarray(_tap_validity_masks(H, W, KH, KW, padding))   # (KK, HW)
    dww = dw_w.reshape(C, KK).astype(jnp.float32)
    dww_f = jnp.tile(dww, (FOLD, 1))                                  # (fold*C, KK)
    coeff = dww_f.T[:, :, None] * masks[:, None, :]                   # (KK, fold*C, HW)

    pww = pw_w.reshape(O, C).astype(jnp.float32)
    # Fold depthwise bias into pointwise bias:
    #   pw(dw(x) + b_dw) + b_pw == pw(dw(x)) + (pww @ b_dw + b_pw)
    pwb_eff = (pw_b.astype(jnp.float32) + pww @ dw_b.astype(jnp.float32)).reshape(O, 1)

    out = pl.pallas_call(
        make_fused_dwsep_kernel(H, W, KH, KW, padding, C, O, Bn, FOLD),
        out_shape=jax.ShapeDtypeStruct((N_pad, O, HW), x.dtype),
        grid=(G,),
        in_specs=[
            pl.BlockSpec((Bn, FOLD * C, HW), lambda g: (g, 0, 0)),
            pl.BlockSpec((KK, FOLD * C, HW), lambda g: (0, 0, 0)),
            pl.BlockSpec((O, C), lambda g: (0, 0)),
            pl.BlockSpec((O, 1), lambda g: (0, 0)),
        ],
        out_specs=pl.BlockSpec((FOLD * Bn, O, HW), lambda g: (g, 0, 0)),
        compiler_params=pltpu.CompilerParams(
            dimension_semantics=("parallel",),
            # A couple MiB per step double-buffered; explicit limit keeps the
            # tile budget honest against v7x's smaller (64 MiB) VMEM.
            vmem_limit_bytes=32 * 1024 * 1024),
    )(x_pairs, coeff, pww, pwb_eff)

    return out[:N].reshape(N, O, H, W)   # free reshape; already NCHW order


def reference(x, dw_w, dw_b, pw_w, pw_b, padding):
    """Pure-JAX reference matching torch Conv2d(groups=C) + Conv2d(1x1)."""
    dn = jax.lax.conv_dimension_numbers(x.shape, dw_w.shape, ("NCHW", "OIHW", "NCHW"))
    y = jax.lax.conv_general_dilated(
        x, dw_w, (1, 1), [(padding, padding), (padding, padding)],
        dimension_numbers=dn, feature_group_count=x.shape[1])
    y = y + dw_b[None, :, None, None]
    dn2 = jax.lax.conv_dimension_numbers(y.shape, pw_w.shape, ("NCHW", "OIHW", "NCHW"))
    z = jax.lax.conv_general_dilated(
        y, pw_w, (1, 1), [(0, 0), (0, 0)], dimension_numbers=dn2)
    return z + pw_b[None, :, None, None]


if __name__ == "__main__":
    # Module config: DepthwiseSeparableConv(in_channels=4, out_channels=8,
    #                                       kernel_size=3, padding=1)
    N, C, O, H, W, K, PAD = 2, 4, 8, 16, 16, 3, 1

    key = jax.random.PRNGKey(0)
    kx, k1, k2, k3, k4 = jax.random.split(key, 5)
    x = jax.random.normal(kx, (N, C, H, W), jnp.float32)
    dw_w = jax.random.normal(k1, (C, 1, K, K), jnp.float32) * 0.1   # depthwise weight
    dw_b = jax.random.normal(k2, (C,), jnp.float32) * 0.1           # depthwise bias
    pw_w = jax.random.normal(k3, (O, C, 1, 1), jnp.float32) * 0.1   # pointwise weight
    pw_b = jax.random.normal(k4, (O,), jnp.float32) * 0.1           # pointwise bias

    out = depthwise_separable_conv(x, dw_w, dw_b, pw_w, pw_b, padding=PAD)
    out = jax.block_until_ready(out)

    ref = reference(x, dw_w, dw_b, pw_w, pw_b, PAD)
    assert out.shape == (N, O, H, W), out.shape
    assert jnp.allclose(out, ref, atol=1e-4, rtol=1e-4), "mismatch vs reference"

    print("KERNEL_OK")
</pallas_src>

<mosaic_0001>
module attributes {stable_mosaic.version = 11 : i64} {
  func.func @kernel(%arg0: i32, %arg1: memref<1x8x256xf32, #tpu.memory_space<vmem>>, %arg2: memref<9x8x256xf32, #tpu.memory_space<vmem>>, %arg3: memref<8x4xf32, #tpu.memory_space<vmem>>, %arg4: memref<8x1xf32, #tpu.memory_space<vmem>>, %arg5: memref<2x8x256xf32, #tpu.memory_space<vmem>>) attributes {dimension_semantics = [#tpu.dimension_semantics<parallel>], iteration_bounds = array<i64: 1>, scalar_prefetch = 0 : i64, scratch_operands = 0 : i64, tpu.core_type = #tpu.core_type<tc>, window_params = [{transform_indices = @transform_0, window_bounds = array<i64: 1, 8, 256>}, {pipeline_mode = #tpu.pipeline_mode<synchronous>, transform_indices = @transform_1, window_bounds = array<i64: 9, 8, 256>}, {pipeline_mode = #tpu.pipeline_mode<synchronous>, transform_indices = @transform_2, window_bounds = array<i64: 8, 4>}, {pipeline_mode = #tpu.pipeline_mode<synchronous>, transform_indices = @transform_3, window_bounds = array<i64: 8, 1>}, {transform_indices = @transform_4, window_bounds = array<i64: 2, 8, 256>}]} {
    %c0 = arith.constant 0 : index
    %c0_0 = arith.constant 0 : index
    %0 = vector.load %arg3[%c0, %c0_0] : memref<8x4xf32, #tpu.memory_space<vmem>>, vector<8x4xf32>
    %c0_1 = arith.constant 0 : index
    %c0_2 = arith.constant 0 : index
    %1 = vector.load %arg4[%c0_1, %c0_2] : memref<8x1xf32, #tpu.memory_space<vmem>>, vector<8x1xf32>
    %2 = vector.shape_cast %1 : vector<8x1xf32> to vector<8x1xf32>
    %3 = vector.broadcast %2 : vector<8x1xf32> to vector<8x256xf32>
    %c0_3 = arith.constant 0 : index
    %c0_4 = arith.constant 0 : index
    %c0_5 = arith.constant 0 : index
    %4 = vector.load %arg1[%c0_3, %c0_4, %c0_5] : memref<1x8x256xf32, #tpu.memory_space<vmem>>, vector<1x8x256xf32>
    %5 = vector.shape_cast %4 : vector<1x8x256xf32> to vector<8x256xf32>
    %cst = arith.constant 0.000000e+00 : f32
    %6 = vector.broadcast %cst : f32 to vector<8x256xf32>
    %c17_i32 = arith.constant 17 : i32
    %7 = tpu.dynamic_rotate %5 by %c17_i32 dim 1 : vector<8x256xf32>, i32 -> vector<8x256xf32>
    %c0_6 = arith.constant 0 : index
    %c0_7 = arith.constant 0 : index
    %c0_8 = arith.constant 0 : index
    %8 = vector.load %arg2[%c0_6, %c0_7, %c0_8] : memref<9x8x256xf32, #tpu.memory_space<vmem>>, vector<1x8x256xf32>
    %9 = vector.shape_cast %8 : vector<1x8x256xf32> to vector<8x256xf32>
    %10 = arith.mulf %7, %9 : vector<8x256xf32>
    %11 = arith.addf %6, %10 : vector<8x256xf32>
    %c16_i32 = arith.constant 16 : i32
    %12 = tpu.dynamic_rotate %5 by %c16_i32 dim 1 : vector<8x256xf32>, i32 -> vector<8x256xf32>
    %c1 = arith.constant 1 : index
    %c0_9 = arith.constant 0 : index
    %c0_10 = arith.constant 0 : index
    %13 = vector.load %arg2[%c1, %c0_9, %c0_10] : memref<9x8x256xf32, #tpu.memory_space<vmem>>, vector<1x8x256xf32>
    %14 = vector.shape_cast %13 : vector<1x8x256xf32> to vector<8x256xf32>
    %15 = arith.mulf %12, %14 : vector<8x256xf32>
    %16 = arith.addf %11, %15 : vector<8x256xf32>
    %c15_i32 = arith.constant 15 : i32
    %17 = tpu.dynamic_rotate %5 by %c15_i32 dim 1 : vector<8x256xf32>, i32 -> vector<8x256xf32>
    %c2 = arith.constant 2 : index
    %c0_11 = arith.constant 0 : index
    %c0_12 = arith.constant 0 : index
    %18 = vector.load %arg2[%c2, %c0_11, %c0_12] : memref<9x8x256xf32, #tpu.memory_space<vmem>>, vector<1x8x256xf32>
    %19 = vector.shape_cast %18 : vector<1x8x256xf32> to vector<8x256xf32>
    %20 = arith.mulf %17, %19 : vector<8x256xf32>
    %21 = arith.addf %16, %20 : vector<8x256xf32>
    %c1_i32 = arith.constant 1 : i32
    %22 = tpu.dynamic_rotate %5 by %c1_i32 dim 1 : vector<8x256xf32>, i32 -> vector<8x256xf32>
    %c3 = arith.constant 3 : index
    %c0_13 = arith.constant 0 : index
    %c0_14 = arith.constant 0 : index
    %23 = vector.load %arg2[%c3, %c0_13, %c0_14] : memref<9x8x256xf32, #tpu.memory_space<vmem>>, vector<1x8x256xf32>
    %24 = vector.shape_cast %23 : vector<1x8x256xf32> to vector<8x256xf32>
    %25 = arith.mulf %22, %24 : vector<8x256xf32>
    %26 = arith.addf %21, %25 : vector<8x256xf32>
    %c4 = arith.constant 4 : index
    %c0_15 = arith.constant 0 : index
    %c0_16 = arith.constant 0 : index
    %27 = vector.load %arg2[%c4, %c0_15, %c0_16] : memref<9x8x256xf32, #tpu.memory_space<vmem>>, vector<1x8x256xf32>
    %28 = vector.shape_cast %27 : vector<1x8x256xf32> to vector<8x256xf32>
    %29 = arith.mulf %5, %28 : vector<8x256xf32>
    %30 = arith.addf %26, %29 : vector<8x256xf32>
    %c255_i32 = arith.constant 255 : i32
    %31 = tpu.dynamic_rotate %5 by %c255_i32 dim 1 : vector<8x256xf32>, i32 -> vector<8x256xf32>
    %c5 = arith.constant 5 : index
    %c0_17 = arith.constant 0 : index
    %c0_18 = arith.constant 0 : index
    %32 = vector.load %arg2[%c5, %c0_17, %c0_18] : memref<9x8x256xf32, #tpu.memory_space<vmem>>, vector<1x8x256xf32>
    %33 = vector.shape_cast %32 : vector<1x8x256xf32> to vector<8x256xf32>
    %34 = arith.mulf %31, %33 : vector<8x256xf32>
    %35 = arith.addf %30, %34 : vector<8x256xf32>
    %c241_i32 = arith.constant 241 : i32
    %36 = tpu.dynamic_rotate %5 by %c241_i32 dim 1 : vector<8x256xf32>, i32 -> vector<8x256xf32>
    %c6 = arith.constant 6 : index
    %c0_19 = arith.constant 0 : index
    %c0_20 = arith.constant 0 : index
    %37 = vector.load %arg2[%c6, %c0_19, %c0_20] : memref<9x8x256xf32, #tpu.memory_space<vmem>>, vector<1x8x256xf32>
    %38 = vector.shape_cast %37 : vector<1x8x256xf32> to vector<8x256xf32>
    %39 = arith.mulf %36, %38 : vector<8x256xf32>
    %40 = arith.addf %35, %39 : vector<8x256xf32>
    %c240_i32 = arith.constant 240 : i32
    %41 = tpu.dynamic_rotate %5 by %c240_i32 dim 1 : vector<8x256xf32>, i32 -> vector<8x256xf32>
    %c7 = arith.constant 7 : index
    %c0_21 = arith.constant 0 : index
    %c0_22 = arith.constant 0 : index
    %42 = vector.load %arg2[%c7, %c0_21, %c0_22] : memref<9x8x256xf32, #tpu.memory_space<vmem>>, vector<1x8x256xf32>
    %43 = vector.shape_cast %42 : vector<1x8x256xf32> to vector<8x256xf32>
    %44 = arith.mulf %41, %43 : vector<8x256xf32>
    %45 = arith.addf %40, %44 : vector<8x256xf32>
    %c239_i32 = arith.constant 239 : i32
    %46 = tpu.dynamic_rotate %5 by %c239_i32 dim 1 : vector<8x256xf32>, i32 -> vector<8x256xf32>
    %c8 = arith.constant 8 : index
    %c0_23 = arith.constant 0 : index
    %c0_24 = arith.constant 0 : index
    %47 = vector.load %arg2[%c8, %c0_23, %c0_24] : memref<9x8x256xf32, #tpu.memory_space<vmem>>, vector<1x8x256xf32>
    %48 = vector.shape_cast %47 : vector<1x8x256xf32> to vector<8x256xf32>
    %49 = arith.mulf %46, %48 : vector<8x256xf32>
    %50 = arith.addf %45, %49 : vector<8x256xf32>
    %51 = vector.extract_strided_slice %0 {offsets = [0, 0], sizes = [8, 1], strides = [1, 1]} : vector<8x4xf32> to vector<8x1xf32>
    %52 = vector.extract_strided_slice %50 {offsets = [0, 0], sizes = [1, 256], strides = [1, 1]} : vector<8x256xf32> to vector<1x256xf32>
    %53 = vector.broadcast %51 : vector<8x1xf32> to vector<8x256xf32>
    %54 = vector.broadcast %52 : vector<1x256xf32> to vector<8x256xf32>
    %55 = arith.mulf %53, %54 : vector<8x256xf32>
    %56 = arith.addf %3, %55 : vector<8x256xf32>
    %57 = vector.extract_strided_slice %0 {offsets = [0, 1], sizes = [8, 1], strides = [1, 1]} : vector<8x4xf32> to vector<8x1xf32>
    %58 = vector.extract_strided_slice %50 {offsets = [1, 0], sizes = [1, 256], strides = [1, 1]} : vector<8x256xf32> to vector<1x256xf32>
    %59 = vector.broadcast %57 : vector<8x1xf32> to vector<8x256xf32>
    %60 = vector.broadcast %58 : vector<1x256xf32> to vector<8x256xf32>
    %61 = arith.mulf %59, %60 : vector<8x256xf32>
    %62 = arith.addf %56, %61 : vector<8x256xf32>
    %63 = vector.extract_strided_slice %0 {offsets = [0, 2], sizes = [8, 1], strides = [1, 1]} : vector<8x4xf32> to vector<8x1xf32>
    %64 = vector.extract_strided_slice %50 {offsets = [2, 0], sizes = [1, 256], strides = [1, 1]} : vector<8x256xf32> to vector<1x256xf32>
    %65 = vector.broadcast %63 : vector<8x1xf32> to vector<8x256xf32>
    %66 = vector.broadcast %64 : vector<1x256xf32> to vector<8x256xf32>
    %67 = arith.mulf %65, %66 : vector<8x256xf32>
    %68 = arith.addf %62, %67 : vector<8x256xf32>
    %69 = vector.extract_strided_slice %0 {offsets = [0, 3], sizes = [8, 1], strides = [1, 1]} : vector<8x4xf32> to vector<8x1xf32>
    %70 = vector.extract_strided_slice %50 {offsets = [3, 0], sizes = [1, 256], strides = [1, 1]} : vector<8x256xf32> to vector<1x256xf32>
    %71 = vector.broadcast %69 : vector<8x1xf32> to vector<8x256xf32>
    %72 = vector.broadcast %70 : vector<1x256xf32> to vector<8x256xf32>
    %73 = arith.mulf %71, %72 : vector<8x256xf32>
    %74 = arith.addf %68, %73 : vector<8x256xf32>
    %c0_25 = arith.constant 0 : index
    %c0_26 = arith.constant 0 : index
    %c0_27 = arith.constant 0 : index
    %75 = vector.load %arg5[%c0_25, %c0_26, %c0_27] : memref<2x8x256xf32, #tpu.memory_space<vmem>>, vector<1x8x256xf32>
    %76 = vector.shape_cast %75 : vector<1x8x256xf32> to vector<8x256xf32>
    %77 = vector.shape_cast %74 : vector<8x256xf32> to vector<1x8x256xf32>
    tpu.vector_store %arg5[%c0_25, %c0_26, %c0_27], %77 {strides = array<i32>} : memref<2x8x256xf32, #tpu.memory_space<vmem>>, vector<1x8x256xf32>,
    %78 = vector.extract_strided_slice %0 {offsets = [0, 0], sizes = [8, 1], strides = [1, 1]} : vector<8x4xf32> to vector<8x1xf32>
    %79 = vector.extract_strided_slice %50 {offsets = [4, 0], sizes = [1, 256], strides = [1, 1]} : vector<8x256xf32> to vector<1x256xf32>
    %80 = vector.broadcast %78 : vector<8x1xf32> to vector<8x256xf32>
    %81 = vector.broadcast %79 : vector<1x256xf32> to vector<8x256xf32>
    %82 = arith.mulf %80, %81 : vector<8x256xf32>
    %83 = arith.addf %3, %82 : vector<8x256xf32>
    %84 = vector.extract_strided_slice %0 {offsets = [0, 1], sizes = [8, 1], strides = [1, 1]} : vector<8x4xf32> to vector<8x1xf32>
    %85 = vector.extract_strided_slice %50 {offsets = [5, 0], sizes = [1, 256], strides = [1, 1]} : vector<8x256xf32> to vector<1x256xf32>
    %86 = vector.broadcast %84 : vector<8x1xf32> to vector<8x256xf32>
    %87 = vector.broadcast %85 : vector<1x256xf32> to vector<8x256xf32>
    %88 = arith.mulf %86, %87 : vector<8x256xf32>
    %89 = arith.addf %83, %88 : vector<8x256xf32>
    %90 = vector.extract_strided_slice %0 {offsets = [0, 2], sizes = [8, 1], strides = [1, 1]} : vector<8x4xf32> to vector<8x1xf32>
    %91 = vector.extract_strided_slice %50 {offsets = [6, 0], sizes = [1, 256], strides = [1, 1]} : vector<8x256xf32> to vector<1x256xf32>
    %92 = vector.broadcast %90 : vector<8x1xf32> to vector<8x256xf32>
    %93 = vector.broadcast %91 : vector<1x256xf32> to vector<8x256xf32>
    %94 = arith.mulf %92, %93 : vector<8x256xf32>
    %95 = arith.addf %89, %94 : vector<8x256xf32>
    %96 = vector.extract_strided_slice %0 {offsets = [0, 3], sizes = [8, 1], strides = [1, 1]} : vector<8x4xf32> to vector<8x1xf32>
    %97 = vector.extract_strided_slice %50 {offsets = [7, 0], sizes = [1, 256], strides = [1, 1]} : vector<8x256xf32> to vector<1x256xf32>
    %98 = vector.broadcast %96 : vector<8x1xf32> to vector<8x256xf32>
    %99 = vector.broadcast %97 : vector<1x256xf32> to vector<8x256xf32>
    %100 = arith.mulf %98, %99 : vector<8x256xf32>
    %101 = arith.addf %95, %100 : vector<8x256xf32>
    %c1_28 = arith.constant 1 : index
    %c0_29 = arith.constant 0 : index
    %c0_30 = arith.constant 0 : index
    %102 = vector.load %arg5[%c1_28, %c0_29, %c0_30] : memref<2x8x256xf32, #tpu.memory_space<vmem>>, vector<1x8x256xf32>
    %103 = vector.shape_cast %102 : vector<1x8x256xf32> to vector<8x256xf32>
    %104 = vector.shape_cast %101 : vector<8x256xf32> to vector<1x8x256xf32>
    tpu.vector_store %arg5[%c1_28, %c0_29, %c0_30], %104 {strides = array<i32>} : memref<2x8x256xf32, #tpu.memory_space<vmem>>, vector<1x8x256xf32>,
    return
  }
  func.func @transform_0(%arg0: i32) -> (i32, i32, i32) {
    %c0_i32 = arith.constant 0 : i32
    %c0_i32_0 = arith.constant 0 : i32
    %c0_i32_1 = arith.constant 0 : i32
    return %arg0, %c0_i32, %c0_i32_0 : i32, i32, i32
  }
  func.func @transform_1(%arg0: i32) -> (i32, i32, i32) {
    %c0_i32 = arith.constant 0 : i32
    %c0_i32_0 = arith.constant 0 : i32
    %c0_i32_1 = arith.constant 0 : i32
    %c0_i32_2 = arith.constant 0 : i32
    return %c0_i32, %c0_i32_0, %c0_i32_1 : i32, i32, i32
  }
  func.func @transform_2(%arg0: i32) -> (i32, i32) {
    %c0_i32 = arith.constant 0 : i32
    %c0_i32_0 = arith.constant 0 : i32
    %c0_i32_1 = arith.constant 0 : i32
    return %c0_i32, %c0_i32_0 : i32, i32
  }
  func.func @transform_3(%arg0: i32) -> (i32, i32) {
    %c0_i32 = arith.constant 0 : i32
    %c0_i32_0 = arith.constant 0 : i32
    %c0_i32_1 = arith.constant 0 : i32
    return %c0_i32, %c0_i32_0 : i32, i32
  }
  func.func @transform_4(%arg0: i32) -> (i32, i32, i32) {
    %c0_i32 = arith.constant 0 : i32
    %c0_i32_0 = arith.constant 0 : i32
    %c0_i32_1 = arith.constant 0 : i32
    return %arg0, %c0_i32, %c0_i32_0 : i32, i32, i32
  }
}

</mosaic_0001>

<bundles_post_ra>
// kernel: depthwise_separable_conv.1
= control target key start
LH: loop header
LB: loop body
LE: loop exit
PB: predicated region body
PF: predicated region fallthrough
CT: control target
= control target key end

     0   :  { %v304_v1 = vmov 0   ;;  %s305_s17 = smov 16   ;;  %s306_s18 = smov 17   ;;  %v313_v5 = vmov 1   ;;  %v314_v6 = vmov 2   ;;  %v315_v7 = vmov 3   ;;  %s457_s0 = inlined_call_operand.vmem [shape: f32[1,8,256], index: 0, kind: input, shape index: {}]   ;;  %s458_s3 = inlined_call_operand.vmem [shape: f32[8,1], index: 3, kind: input, shape index: {}]   ;;  %s459_s2 = inlined_call_operand.vmem [shape: f32[8,4], index: 2, kind: input, shape index: {}]   ;;  %s460_s1 = inlined_call_operand.vmem [shape: f32[9,8,256], index: 1, kind: input, shape index: {}]   ;;  %s461_s4 = inlined_call_operand.vmem [shape: f32[2,8,256], index: 4, kind: output, shape index: {}]  }
   0x1   :  { %v344_v0 = vld [vmem:[%s457_s0] sm:$0xff]  ;;  %299 = vset.pattern.permute.xlu1 %v304_v1  ;;  %298 = vset.pattern.permute.xlu0 %v304_v1  ;;  %v351_v2 = vld [vmem:[%s457_s0 + $0x8] sm:$0xff]  ;;  %s307_s21 = smov 15   ;;  %s308_s22 = smov 1   ;;  %v30_v10 = vlaneseq  ;;  %v268_v18 = vld [vmem:[%s460_s1 + $0x10] sm:$0xff] }
   0x2   :  { %41 = vrot.lane.b32.xlu1 %v344_v0, %s305_s17  ;;  %26 = vrot.lane.b32.xlu0 %v344_v0, %s306_s18  ;;  %s309_s23 = smov 127   ;;  %s310_s0 = smov 113   ;;  %v18_v3 = vld [vmem:[%s458_s3] sm:$0xff]  ;;  %v269_v19 = vld [vmem:[%s460_s1 + $0x18] sm:$0xff] }
   0x3   :  { %s311_s24 = smov 112   ;;  %s312_s25 = smov 111   ;;  %v17_v4 = vld [vmem:[%s459_s2] sm:$0xff]  ;;  %v374_v13 = vand.u32 127, %v30_v10  ;;  %v36_v23 = vld [vmem:[%s460_s1 + $0x8] sm:$0xff]  ;;  %v272_v36 = vld [vmem:[%s460_s1 + $0x30] sm:$0xff] }
   0x4   :  { %v35_v22 = vld [vmem:[%s460_s1] sm:$0xff]  ;;  %v271_v29 = vld [vmem:[%s460_s1 + $0x28] sm:$0xff]  ;;  %v273_v37 = vld [vmem:[%s460_s1 + $0x38] sm:$0xff] }
   0x5   :  { %vm45_vm0 = vcmp.lt.s32.totalorder %v374_v13, 16  ;;  %vm32_vm1 = vcmp.lt.s32.totalorder %v374_v13, 17  ;;  %vm59_vm2 = vcmp.lt.s32.totalorder %v374_v13, 15  ;;  %vm73_vm3 = vcmp.lt.s32.totalorder %v374_v13, 1  ;;  %v270_v28 = vld [vmem:[%s460_s1 + $0x20] sm:$0xff]  ;;  %v275_v48 = vld [vmem:[%s460_s1 + $0x48] sm:$0xff] }
   0x6   :  { %43 = vrot.lane.b32.xlu1 %v351_v2, %s305_s17  ;;  %28 = vrot.lane.b32.xlu0 %v351_v2, %s306_s18  ;;  %v274_v49 = vld [vmem:[%s460_s1 + $0x40] sm:$0xff]  ;;  %vm94_vm4 = vcmp.lt.s32.totalorder %v374_v13, 127  ;;  %v87_v54 = vmul.f32 %v275_v48, %v351_v2  ;;  %vm108_vm5 = vcmp.lt.s32.totalorder %v374_v13, 113  ;;  %v276_v58 = vld [vmem:[%s460_s1 + $0x50] sm:$0xff]  ;;  %vm122_vm6 = vcmp.lt.s32.totalorder %v374_v13, 112 }
   0x7   :  { %v86_v57 = vmul.f32 %v274_v49, %v344_v0  ;;  %v277_v59 = vld [vmem:[%s460_s1 + $0x58] sm:$0xff]  ;;  %v278_v62 = vld [vmem:[%s460_s1 + $0x60] sm:$0xff]  ;;  %v279_v63 = vld [vmem:[%s460_s1 + $0x68] sm:$0xff]  ;;  %vm136_vm7 = vcmp.lt.s32.totalorder %v374_v13, 111 }
   0xa   :  { %57 = vrot.lane.b32.xlu1 %v351_v2, %s307_s21  ;;  %55 = vrot.lane.b32.xlu0 %v344_v0, %s307_s21 }
   0xe   :  { %71 = vrot.lane.b32.xlu1 %v351_v2, %s308_s22  ;;  %69 = vrot.lane.b32.xlu0 %v344_v0, %s308_s22 }
  0x12   :  { %92 = vrot.lane.b32.xlu1 %v351_v2, %s309_s23  ;;  %90 = vrot.lane.b32.xlu0 %v344_v0, %s309_s23 }
  0x16   :  { %106 = vrot.lane.b32.xlu1 %v351_v2, %s310_s0  ;;  %104 = vrot.lane.b32.xlu0 %v344_v0, %s310_s0 }
  0x1a   :  { %120 = vrot.lane.b32.xlu1 %v351_v2, %s311_s24  ;;  %118 = vrot.lane.b32.xlu0 %v344_v0, %s311_s24 }
  0x1e   :  { %134 = vrot.lane.b32.xlu1 %v351_v2, %s312_s25  ;;  %132 = vrot.lane.b32.xlu0 %v344_v0, %s312_s25 }
  0x22   :  { %21 = vperm.xlu1 %299, %v18_v3   ;;  %148 = vperm.xlu0 %298, %v17_v4  }
  0x26   :  { %300 = vset.pattern.permute.xlu1 %v313_v5  ;;  %301 = vset.pattern.permute.xlu0 %v314_v6 }
  0x27   :  { %164 = vperm.xlu1 %300, %v17_v4   ;;  %180 = vperm.xlu0 %301, %v17_v4  }
  0x2b   :  { %302 = vset.pattern.permute.xlu1 %v315_v7  ;;  %303 = vset.pattern.permute.xlu0 %v315_v7 }
  0x2c   :  { %196 = vperm.xlu1 %302, %v17_v4  }
  0x74   :  { %v42_v8 = vpop.permute.xlu1 %41  ;;  %v27_v9 = vpop.permute.xlu0 %26 }
  0x78   :  { %v44_v11 = vpop.permute.xlu1 %43  ;;  %v29_v12 = vpop.permute.xlu0 %28 }
  0x79   :  { %v46_v20 = vsel %vm45_vm0, %v42_v8, %v44_v11  ;;  %v47_v21 = vsel %vm45_vm0, %v44_v11, %v42_v8  ;;  %v33_v24 = vsel %vm32_vm1, %v27_v9, %v29_v12  ;;  %v34_v25 = vsel %vm32_vm1, %v29_v12, %v27_v9  ;;  %v280_v8 = vld [vmem:[%s460_s1 + $0x70] sm:$0xff]  ;;  %v281_v9 = vld [vmem:[%s460_s1 + $0x78] sm:$0xff] }
  0x7a   :  { %v51_v32 = vmul.f32 %v268_v18, %v47_v21  ;;  %v52_v33 = vmul.f32 %v269_v19, %v46_v20  ;;  %v37_v34 = vmul.f32 %v35_v22, %v34_v25  ;;  %v38_v35 = vmul.f32 %v36_v23, %v33_v24 }
  0x7b   :  { %v152_v24 = vshrl.u32 %v30_v10, 7 }
  0x7c   :  { %v58_v14 = vpop.permute.xlu1 %57  ;;  %v56_v15 = vpop.permute.xlu0 %55  ;;  %v53_v44 = vadd.f32 %v51_v32, %v37_v34  ;;  %v54_v45 = vadd.f32 %v52_v33, %v38_v35 }
  0x7d   :  { %v60_v30 = vsel %vm59_vm2, %v56_v15, %v58_v14  ;;  %v61_v31 = vsel %vm59_vm2, %v58_v14, %v56_v15  ;;  %v153_v33 = vsub.s32 0, %v152_v24  ;;  %v215_v34 = vsub.s32 4, %v152_v24 }
  0x7e   :  { %v65_v40 = vmul.f32 %v270_v28, %v61_v31  ;;  %v66_v41 = vmul.f32 %v271_v29, %v60_v30  ;;  %v169_v35 = vsub.s32 1, %v152_v24  ;;  %v239_v10 = vsub.s32 6, %v152_v24 }
  0x7f   :  { %v251_v48 = vsub.s32 7, %v152_v24 }
  0x80   :  { %v72_v16 = vpop.permute.xlu1 %71  ;;  %v70_v17 = vpop.permute.xlu0 %69  ;;  %v67_v50 = vadd.f32 %v65_v40, %v53_v44  ;;  %v68_v51 = vadd.f32 %v66_v41, %v54_v45 }
  0x81   :  { %v74_v38 = vsel %vm73_vm3, %v70_v17, %v72_v16  ;;  %v75_v39 = vsel %vm73_vm3, %v72_v16, %v70_v17  ;;  %v282_v16 = vld [vmem:[%s460_s1 + $0x80] sm:$0xff]  ;;  %v283_v17 = vld [vmem:[%s460_s1 + $0x88] sm:$0xff] }
  0x82   :  { %v79_v46 = vmul.f32 %v272_v36, %v75_v39  ;;  %v80_v47 = vmul.f32 %v273_v37, %v74_v38  ;;  %v227_v36 = vsub.s32 5, %v152_v24 }
  0x84   :  { %v93_v26 = vpop.permute.xlu1 %92  ;;  %v91_v27 = vpop.permute.xlu0 %90  ;;  %v81_v55 = vadd.f32 %v79_v46, %v67_v50  ;;  %v82_v56 = vadd.f32 %v80_v47, %v68_v51  ;;  %v201_v47 = vsub.s32 3, %v152_v24 }
  0x85   :  { %v95_v60 = vsel %vm94_vm4, %v91_v27, %v93_v26  ;;  %v96_v61 = vsel %vm94_vm4, %v93_v26, %v91_v27 }
  0x86   :  { %v89_v2 = vadd.f32 %v87_v54, %v82_v56  ;;  %v88_v3 = vadd.f32 %v86_v57, %v81_v55  ;;  %v100_v4 = vmul.f32 %v276_v58, %v95_v60  ;;  %v101_v5 = vmul.f32 %v277_v59, %v96_v61 }
  0x88   :  { %v107_v42 = vpop.permute.xlu1 %106  ;;  %v105_v43 = vpop.permute.xlu0 %104  ;;  %v102_v20 = vadd.f32 %v100_v4, %v88_v3  ;;  %v103_v21 = vadd.f32 %v101_v5, %v89_v2 }
  0x89   :  { %v109_v0 = vsel %vm108_vm5, %v105_v43, %v107_v42  ;;  %v110_v1 = vsel %vm108_vm5, %v107_v42, %v105_v43  ;;  %v185_v42 = vsub.s32 2, %v152_v24 }
  0x8a   :  { %v114_v14 = vmul.f32 %v278_v62, %v109_v0  ;;  %v115_v15 = vmul.f32 %v279_v63, %v110_v1 }
  0x8c   :  { %v121_v52 = vpop.permute.xlu1 %120  ;;  %v119_v53 = vpop.permute.xlu0 %118  ;;  %v116_v25 = vadd.f32 %v114_v14, %v102_v20  ;;  %v117_v26 = vadd.f32 %v115_v15, %v103_v21 }
  0x8d   :  { %v123_v11 = vsel %vm122_vm6, %v119_v53, %v121_v52  ;;  %v124_v12 = vsel %vm122_vm6, %v121_v52, %v119_v53 }
  0x8e   :  { %v128_v22 = vmul.f32 %v280_v8, %v123_v11  ;;  %v129_v23 = vmul.f32 %v281_v9, %v124_v12 }
  0x90   :  { %v135_v6 = vpop.permute.xlu1 %134  ;;  %v133_v7 = vpop.permute.xlu0 %132  ;;  %v130_v29 = vadd.f32 %v128_v22, %v116_v25  ;;  %v131_v30 = vadd.f32 %v129_v23, %v117_v26 }
  0x91   :  { %v137_v18 = vsel %vm136_vm7, %v133_v7, %v135_v6  ;;  %v138_v19 = vsel %vm136_vm7, %v135_v6, %v133_v7 }
  0x92   :  { %v142_v27 = vmul.f32 %v282_v16, %v137_v18  ;;  %v143_v28 = vmul.f32 %v283_v17, %v138_v19 }
  0x94   :  { %v144_v31 = vadd.f32 %v142_v27, %v130_v29  ;;  %v145_v32 = vadd.f32 %v143_v28, %v131_v30 }
  0x96   :  { %v158_v13 = vrot.slane %v145_v32, %v153_v33  ;;  %v220_v37 = vrot.slane %v145_v32, %v215_v34  ;;  %v154_v38 = vrot.slane %v144_v31, %v153_v33  ;;  %v216_v39 = vrot.slane %v144_v31, %v215_v34 }
  0x97   :  { %v170_v49 = vrot.slane %v144_v31, %v169_v35  ;;  %v174_v50 = vrot.slane %v145_v32, %v169_v35  ;;  %v228_v51 = vrot.slane %v144_v31, %v227_v36  ;;  %v232_v52 = vrot.slane %v145_v32, %v227_v36 }
  0x98   :  { %v190_v53 = vrot.slane %v145_v32, %v185_v42  ;;  %v244_v54 = vrot.slane %v145_v32, %v239_v10  ;;  %v186_v55 = vrot.slane %v144_v31, %v185_v42  ;;  %v240_v56 = vrot.slane %v144_v31, %v239_v10 }
  0x99   :  { %v202_v12 = vrot.slane %v144_v31, %v201_v47  ;;  %v206_v14 = vrot.slane %v145_v32, %v201_v47  ;;  %v252_v15 = vrot.slane %v144_v31, %v251_v48  ;;  %v256_v16 = vrot.slane %v145_v32, %v251_v48 }
  0xa1   :  { %v22_v40 = vpop.permute.xlu1 %21  ;;  %v149_v41 = vpop.permute.xlu0 %148 }
  0xa2   :  { %v159_v43 = vmul.f32 %v154_v38, %v149_v41  ;;  %v160_v44 = vmul.f32 %v158_v13, %v149_v41  ;;  %v221_v45 = vmul.f32 %v216_v39, %v149_v41  ;;  %v222_v46 = vmul.f32 %v220_v37, %v149_v41 }
  0xa4   :  { %v161_v57 = vadd.f32 %v159_v43, %v22_v40  ;;  %v162_v58 = vadd.f32 %v160_v44, %v22_v40  ;;  %v223_v59 = vadd.f32 %v221_v45, %v22_v40  ;;  %v224_v60 = vadd.f32 %v222_v46, %v22_v40 }
  0xa6   :  { %v165_v61 = vpop.permute.xlu1 %164  ;;  %v181_v62 = vpop.permute.xlu0 %180 }
  0xa7   :  { %v175_v63 = vmul.f32 %v170_v49, %v165_v61  ;;  %v176_v0 = vmul.f32 %v174_v50, %v165_v61  ;;  %v233_v1 = vmul.f32 %v228_v51, %v165_v61  ;;  %v234_v2 = vmul.f32 %v232_v52, %v165_v61 }
  0xa8   :  { %v191_v3 = vmul.f32 %v186_v55, %v181_v62  ;;  %v192_v4 = vmul.f32 %v190_v53, %v181_v62  ;;  %v245_v5 = vmul.f32 %v240_v56, %v181_v62  ;;  %v246_v6 = vmul.f32 %v244_v54, %v181_v62 }
  0xa9   :  { %v178_v7 = vadd.f32 %v176_v0, %v162_v58  ;;  %v236_v8 = vadd.f32 %v234_v2, %v224_v60  ;;  %v177_v9 = vadd.f32 %v175_v63, %v161_v57  ;;  %v235_v11 = vadd.f32 %v233_v1, %v223_v59 }
  0xab   :  { %v193_v17 = vadd.f32 %v191_v3, %v177_v9  ;;  %v194_v18 = vadd.f32 %v192_v4, %v178_v7  ;;  %v247_v19 = vadd.f32 %v245_v5, %v235_v11  ;;  %v248_v20 = vadd.f32 %v246_v6, %v236_v8  ;;  %v197_v21 = vpop.permute.xlu1 %196 }
  0xac   :  { %v207_v22 = vmul.f32 %v202_v12, %v197_v21  ;;  %v208_v23 = vmul.f32 %v206_v14, %v197_v21  ;;  %v257_v24 = vmul.f32 %v252_v15, %v197_v21  ;;  %v258_v25 = vmul.f32 %v256_v16, %v197_v21 }
  0xae   :  { %v209_v26 = vadd.f32 %v207_v22, %v193_v17  ;;  %v210_v27 = vadd.f32 %v208_v23, %v194_v18  ;;  %v259_v28 = vadd.f32 %v257_v24, %v247_v19  ;;  %v260_v29 = vadd.f32 %v258_v25, %v248_v20 }
  0xb0   :  { %211 = vst [vmem:[%s461_s4] sm:$0xff] %v209_v26  ;;  %212 = vst [vmem:[%s461_s4 + $0x8] sm:$0xff] %v210_v27 }
  0xb1   :  { %284 = vst [vmem:[%s461_s4 + $0x10] sm:$0xff] %v259_v28  ;;  %285 = vst [vmem:[%s461_s4 + $0x18] sm:$0xff] %v260_v29 }

</bundles_post_ra>
